<compile_context>
chip_gen: v5e
topology: v5e:2x2
jax: 0.10.0
libtpu: 0.0.40
codegen_flags: <defaults>
</compile_context>

<pallas_src>
import functools

import jax
import jax.numpy as jnp
import numpy as np
from jax.experimental import pallas as pl
from jax.experimental.pallas import tpu as pltpu

_LANE = 128


# ----------------------------------------------------------------------------
# Tiling / VMEM policy
# ----------------------------------------------------------------------------
def _round_up(x, m):
    return ((x + m - 1) // m) * m


def _vmem_capacity_bytes():
    try:
        return int(pltpu.get_tpu_info().vmem_capacity_bytes)
    except Exception:
        return 64 * 1024 * 1024  # conservative fallback (v7x per-core VMEM)


def _choose_tiling(Cin, Cout, N):
    """Generation-aware, byte-budget driven tiling.

    Returns (tCout, tK, tN, n_pad, vmem_limit_bytes)."""
    cap = _vmem_capacity_bytes()
    # ~96 MiB scoped limit on 128 MiB parts (v5e/v6e), ~48 MiB on 64 MiB (v7x).
    vmem_limit = int(max(min(cap - (16 << 20), cap * 0.75), 16 << 20))

    # Cout tile: multiple-of-8 divisor of Cout, capped near the MXU width.
    tCout = Cout
    if Cout > 256:
        for cand in range(256, 7, -8):
            if Cout % cand == 0:
                tCout = cand
                break
    # Cin (K) tile: must be a multiple of 128 (it is the weight's lane dim).
    tK = Cin
    if Cin > 256:
        for cand in (256, 128):
            if Cin % cand == 0:
                tK = cand
                break

    if N < _LANE:                      # tiny N: single full-width tile (allowed)
        return tCout, tK, N, N, vmem_limit
    n128 = _round_up(N, _LANE)

    # Streamed bytes per N-column: pass 2 (x + out double-buffered + f32 acc)
    # vs pass 1 (x double-buffered only); resident = weight tiles + Gram
    # accumulators + headroom.
    per_col = 4 * max(2 * tK + 3 * tCout, 2 * Cin)
    resident = 8 * (tCout * tK + 2 * tCout) + 12 * Cin * Cin + (4 << 20)
    avail = max(vmem_limit - resident, 2 << 20)
    max_cols = avail // per_col
    # ~8 MiB single-buffered (x tile + out tile + acc) slab: big enough to
    # amortize the ~0.35 us/grid-step overhead, small enough to double-buffer.
    target_cols = (8 << 20) // (4 * (tK + 2 * tCout))
    tN = min(n128, max_cols, target_cols)
    tN = max(_LANE, (tN // _LANE) * _LANE)

    # Prefer a tile that divides the 128-padded length (no extra padding);
    # otherwise pad N further up to a multiple of tN.
    best = _LANE
    t = tN
    while t >= _LANE:
        if n128 % t == 0:
            best = t
            break
        t -= _LANE
    if best * 2 >= tN:
        return tCout, tK, best, n128, vmem_limit
    return tCout, tK, tN, _round_up(n128, tN), vmem_limit


# ----------------------------------------------------------------------------
# Pass 1: per-(batch, outer-N) moments of x.
# Blocks: x -> (Cin, tN); resident accumulators s (Cin,1), G (Cin,Cin) per
# (b, no) index.  Grid = (B, NO, NI), inner-N axis is the accumulation axis.
# ----------------------------------------------------------------------------
def x_moments_kernel(x_ref, s_ref, g_ref):
    @pl.when(pl.program_id(2) == 0)
    def _():
        s_ref[...] = jnp.zeros_like(s_ref)
        g_ref[...] = jnp.zeros_like(g_ref)

    x = x_ref[...]                                            # (Cin, tN)
    s_ref[...] += jnp.sum(x.astype(jnp.float32), axis=1, keepdims=True)
    g_ref[...] += jax.lax.dot_general(                        # X @ X^T, contracts over tN
        x, x, dimension_numbers=(((1,), (1,)), ((), ())),
        preferred_element_type=jnp.float32)


# ----------------------------------------------------------------------------
# Pass 2: fused conv (BN scale pre-folded into w) + shift + LeakyReLU.
# ----------------------------------------------------------------------------
def fused_conv_bn_lrelu_kernel(x_ref, w_ref, shift_ref, o_ref, *, slope):
    z = jnp.dot(w_ref[...], x_ref[...], preferred_element_type=jnp.float32)
    z = z + shift_ref[...]                                    # (tCout, tN) + (tCout, 1)
    o_ref[...] = jnp.maximum(z, slope * z).astype(o_ref.dtype)


def fused_conv_bn_lrelu_ksplit_kernel(x_ref, w_ref, shift_ref, o_ref, acc_ref, *, slope):
    k = pl.program_id(3)

    @pl.when(k == 0)
    def _():
        acc_ref[...] = jnp.zeros_like(acc_ref)

    acc_ref[...] += jnp.dot(w_ref[...], x_ref[...], preferred_element_type=jnp.float32)

    @pl.when(k == pl.num_programs(3) - 1)
    def _():
        z = acc_ref[...] + shift_ref[...]
        o_ref[...] = jnp.maximum(z, slope * z).astype(o_ref.dtype)


# ----------------------------------------------------------------------------
# Wrapper
# ----------------------------------------------------------------------------
def shared_mlp_forward(x, w, b, gamma, beta, *, eps=1e-5, slope=0.01, use_bf16=False):
    """x: (B, C_in, N) f32; w: (C_out, C_in); b/gamma/beta: (C_out,) -> (B, C_out, N)."""
    B, Cin, N = x.shape
    Cout = w.shape[0]
    # Conv1d bias cancels exactly inside training-mode BatchNorm -> unused (b).

    tCout, tK, tN, n_pad, vmem_limit = _choose_tiling(Cin, Cout, N)
    nN = n_pad // tN
    nCout = Cout // tCout
    nK = Cin // tK

    x_p = x if n_pad == N else jnp.pad(x, ((0, 0), (0, 0), (0, n_pad - N)))
    x_in = x_p.astype(jnp.bfloat16) if use_bf16 else x_p

    # Megacore coverage (v7x, 2 TCs): if B == 1, expose a second parallel axis.
    NO = 2 if (B == 1 and nN >= 2 and nN % 2 == 0) else 1
    NI = nN // NO

    # ---- Pass 1: per-(batch, outer-N) partial x moments ----------------------
    s_part, g_part = pl.pallas_call(
        x_moments_kernel,
        out_shape=(
            jax.ShapeDtypeStruct((B, NO, Cin, 1), jnp.float32),
            jax.ShapeDtypeStruct((B, NO, Cin, Cin), jnp.float32),
        ),
        grid=(B, NO, NI),
        in_specs=[
            pl.BlockSpec((None, Cin, tN), lambda bi, no, ni: (bi, 0, no * NI + ni)),
        ],
        out_specs=(
            pl.BlockSpec((None, None, Cin, 1), lambda bi, no, ni: (bi, no, 0, 0)),
            pl.BlockSpec((None, None, Cin, Cin), lambda bi, no, ni: (bi, no, 0, 0)),
        ),
        compiler_params=pltpu.CompilerParams(
            dimension_semantics=("parallel", "parallel", "arbitrary"),
            vmem_limit_bytes=vmem_limit),
    )(x_in)

    # ---- BN statistics + folded affine (tiny (Cout, Cin) math in the wrapper)
    M = B * N                              # real count; zero-padded columns contribute 0
    s_tot = jnp.sum(s_part, axis=(0, 1))                       # (Cin, 1)
    g_tot = jnp.sum(g_part, axis=(0, 1))                       # (Cin, Cin)
    w32 = w.astype(jnp.float32)
    mean = (w32 @ s_tot) / M                                    # (Cout, 1) mean of W x
    ey2 = jnp.sum((w32 @ g_tot) * w32, axis=1, keepdims=True) / M
    var = jnp.maximum(ey2 - mean * mean, 0.0)                   # biased variance, clamped
    scale = gamma.reshape(Cout, 1) * jax.lax.rsqrt(var + eps)   # (Cout, 1)
    shift = beta.reshape(Cout, 1) - mean * scale                # (Cout, 1)
    w_scaled = w32 * scale                                      # fold BN scale into weight
    w_in = w_scaled.astype(jnp.bfloat16) if use_bf16 else w_scaled

    # ---- Pass 2: fused conv + BN shift + LeakyReLU, lane-dense NCW output ----
    if nK == 1:
        out = pl.pallas_call(
            functools.partial(fused_conv_bn_lrelu_kernel, slope=slope),
            out_shape=jax.ShapeDtypeStruct((B, Cout, n_pad), jnp.float32),
            grid=(B, nCout, nN),
            in_specs=[
                pl.BlockSpec((None, Cin, tN), lambda bi, co, ni: (bi, 0, ni)),
                pl.BlockSpec((tCout, Cin), lambda bi, co, ni: (co, 0)),
                pl.BlockSpec((tCout, 1), lambda bi, co, ni: (co, 0)),
            ],
            out_specs=pl.BlockSpec((None, tCout, tN), lambda bi, co, ni: (bi, co, ni)),
            compiler_params=pltpu.CompilerParams(
                dimension_semantics=("parallel", "parallel", "parallel"),
                vmem_limit_bytes=vmem_limit),
        )(x_in, w_in, shift)
    else:
        out = pl.pallas_call(
            functools.partial(fused_conv_bn_lrelu_ksplit_kernel, slope=slope),
            out_shape=jax.ShapeDtypeStruct((B, Cout, n_pad), jnp.float32),
            grid=(B, nCout, nN, nK),
            in_specs=[
                pl.BlockSpec((None, tK, tN), lambda bi, co, ni, k: (bi, k, ni)),
                pl.BlockSpec((tCout, tK), lambda bi, co, ni, k: (co, k)),
                pl.BlockSpec((tCout, 1), lambda bi, co, ni, k: (co, 0)),
            ],
            out_specs=pl.BlockSpec((None, tCout, tN), lambda bi, co, ni, k: (bi, co, ni)),
            scratch_shapes=[pltpu.VMEM((tCout, tN), jnp.float32)],
            compiler_params=pltpu.CompilerParams(
                dimension_semantics=("parallel", "parallel", "parallel", "arbitrary"),
                vmem_limit_bytes=vmem_limit),
        )(x_in, w_in, shift)

    if n_pad != N:
        out = out[:, :, :N]
    return out


# ----------------------------------------------------------------------------
# Pure-JAX reference (same semantics as the PyTorch module in training mode).
# ----------------------------------------------------------------------------
def shared_mlp_reference(x, w, b, gamma, beta, eps=1e-5, slope=0.01):
    y = jnp.einsum("oc,bcn->bon", w, x) + b[None, :, None]
    mean = jnp.mean(y, axis=(0, 2), keepdims=True)
    var = jnp.mean((y - mean) ** 2, axis=(0, 2), keepdims=True)  # biased
    y_hat = (y - mean) * jax.lax.rsqrt(var + eps)
    y_bn = y_hat * gamma[None, :, None] + beta[None, :, None]
    return jnp.where(y_bn >= 0, y_bn, slope * y_bn)


if __name__ == "__main__":
    # Small deterministic setup consistent with SharedMLP(in_dim=4, out_dim=8)
    B, Cin, Cout, N = 2, 4, 8, 16

    key = jax.random.PRNGKey(0)
    kx, kw, kb, kg, kbeta = jax.random.split(key, 5)

    x = jax.random.normal(kx, (B, Cin, N), dtype=jnp.float32)
    w = jax.random.normal(kw, (Cout, Cin), dtype=jnp.float32) * 0.1   # Conv1d weight (k=1 squeezed)
    b = jax.random.normal(kb, (Cout,), dtype=jnp.float32) * 0.1       # Conv1d bias
    gamma = 1.0 + 0.1 * jax.random.normal(kg, (Cout,), dtype=jnp.float32)   # BN weight
    beta = 0.1 * jax.random.normal(kbeta, (Cout,), dtype=jnp.float32)       # BN bias

    out = jax.block_until_ready(shared_mlp_forward(x, w, b, gamma, beta))

    ref = shared_mlp_reference(x, w, b, gamma, beta)
    np.testing.assert_allclose(np.asarray(out), np.asarray(ref),
                               rtol=1e-4, atol=1e-4)
    assert out.shape == (B, Cout, N)
    print("KERNEL_OK")
</pallas_src>

<mosaic_0001>
module attributes {stable_mosaic.version = 11 : i64} {
  func.func @x_moments_kernel(%arg0: i32, %arg1: i32, %arg2: i32, %arg3: memref<1x4x16xf32, #tpu.memory_space<vmem>>, %arg4: memref<1x1x4x1xf32, #tpu.memory_space<vmem>>, %arg5: memref<1x1x4x4xf32, #tpu.memory_space<vmem>>) attributes {dimension_semantics = [#tpu.dimension_semantics<parallel>, #tpu.dimension_semantics<parallel>, #tpu.dimension_semantics<arbitrary>], iteration_bounds = array<i64: 2, 1, 1>, scalar_prefetch = 0 : i64, scratch_operands = 0 : i64, tpu.core_type = #tpu.core_type<tc>, window_params = [{transform_indices = @transform_0, window_bounds = array<i64: 1, 4, 16>}, {transform_indices = @transform_1, window_bounds = array<i64: 1, 1, 4, 1>}, {transform_indices = @transform_2, window_bounds = array<i64: 1, 1, 4, 4>}]} {
    %c0_i32 = arith.constant 0 : i32
    %0 = arith.cmpi eq, %arg2, %c0_i32 : i32
    %1 = arith.extui %0 : i1 to i32
    %c0_i32_0 = arith.constant 0 : i32
    %2 = arith.cmpi ne, %1, %c0_i32_0 : i32
    scf.if %2 {
      %cst_20 = arith.constant 0.000000e+00 : f32
      %20 = vector.broadcast %cst_20 : f32 to vector<4x1xf32>
      %c0_21 = arith.constant 0 : index
      %c0_22 = arith.constant 0 : index
      %c0_23 = arith.constant 0 : index
      %c0_24 = arith.constant 0 : index
      %21 = vector.load %arg4[%c0_21, %c0_22, %c0_23, %c0_24] : memref<1x1x4x1xf32, #tpu.memory_space<vmem>>, vector<1x1x4x1xf32>
      %22 = vector.shape_cast %21 : vector<1x1x4x1xf32> to vector<4x1xf32>
      %23 = vector.shape_cast %20 : vector<4x1xf32> to vector<1x1x4x1xf32>
      tpu.vector_store %arg4[%c0_21, %c0_22, %c0_23, %c0_24], %23 {strides = array<i32>} : memref<1x1x4x1xf32, #tpu.memory_space<vmem>>, vector<1x1x4x1xf32>,
      %cst_25 = arith.constant 0.000000e+00 : f32
      %24 = vector.broadcast %cst_25 : f32 to vector<4x4xf32>
      %c0_26 = arith.constant 0 : index
      %c0_27 = arith.constant 0 : index
      %c0_28 = arith.constant 0 : index
      %c0_29 = arith.constant 0 : index
      %25 = vector.load %arg5[%c0_26, %c0_27, %c0_28, %c0_29] : memref<1x1x4x4xf32, #tpu.memory_space<vmem>>, vector<1x1x4x4xf32>
      %26 = vector.shape_cast %25 : vector<1x1x4x4xf32> to vector<4x4xf32>
      %27 = vector.shape_cast %24 : vector<4x4xf32> to vector<1x1x4x4xf32>
      tpu.vector_store %arg5[%c0_26, %c0_27, %c0_28, %c0_29], %27 {strides = array<i32>} : memref<1x1x4x4xf32, #tpu.memory_space<vmem>>, vector<1x1x4x4xf32>,
    } else {
    }
    %c0 = arith.constant 0 : index
    %c0_1 = arith.constant 0 : index
    %c0_2 = arith.constant 0 : index
    %3 = vector.load %arg3[%c0, %c0_1, %c0_2] : memref<1x4x16xf32, #tpu.memory_space<vmem>>, vector<1x4x16xf32>
    %4 = vector.shape_cast %3 : vector<1x4x16xf32> to vector<4x16xf32>
    %c0_3 = arith.constant 0 : index
    %c0_4 = arith.constant 0 : index
    %c0_5 = arith.constant 0 : index
    %c0_6 = arith.constant 0 : index
    %5 = vector.load %arg4[%c0_3, %c0_4, %c0_5, %c0_6] : memref<1x1x4x1xf32, #tpu.memory_space<vmem>>, vector<1x1x4x1xf32>
    %6 = vector.shape_cast %5 : vector<1x1x4x1xf32> to vector<4x1xf32>
    %cst = arith.constant dense<0.000000e+00> : vector<4xf32>
    %7 = vector.multi_reduction <add>, %4, %cst [1] : vector<4x16xf32> to vector<4xf32>
    %8 = vector.shape_cast %7 : vector<4xf32> to vector<4x1xf32>
    %9 = arith.addf %6, %8 : vector<4x1xf32>
    %c0_7 = arith.constant 0 : index
    %c0_8 = arith.constant 0 : index
    %c0_9 = arith.constant 0 : index
    %c0_10 = arith.constant 0 : index
    %10 = vector.load %arg4[%c0_7, %c0_8, %c0_9, %c0_10] : memref<1x1x4x1xf32, #tpu.memory_space<vmem>>, vector<1x1x4x1xf32>
    %11 = vector.shape_cast %10 : vector<1x1x4x1xf32> to vector<4x1xf32>
    %12 = vector.shape_cast %9 : vector<4x1xf32> to vector<1x1x4x1xf32>
    tpu.vector_store %arg4[%c0_7, %c0_8, %c0_9, %c0_10], %12 {strides = array<i32>} : memref<1x1x4x1xf32, #tpu.memory_space<vmem>>, vector<1x1x4x1xf32>,
    %c0_11 = arith.constant 0 : index
    %c0_12 = arith.constant 0 : index
    %c0_13 = arith.constant 0 : index
    %c0_14 = arith.constant 0 : index
    %13 = vector.load %arg5[%c0_11, %c0_12, %c0_13, %c0_14] : memref<1x1x4x4xf32, #tpu.memory_space<vmem>>, vector<1x1x4x4xf32>
    %14 = vector.shape_cast %13 : vector<1x1x4x4xf32> to vector<4x4xf32>
    %cst_15 = arith.constant dense<0.000000e+00> : vector<4x4xf32>
    %15 = tpu.matmul %4, %4, %cst_15 {dimension_numbers = #tpu.dot_dimension_numbers<[1], [1], [0], [0], [0, 0, 1, 0], [], []>} : vector<4x16xf32>, vector<4x16xf32>, vector<4x4xf32> -> vector<4x4xf32>
    %16 = arith.addf %14, %15 : vector<4x4xf32>
    %c0_16 = arith.constant 0 : index
    %c0_17 = arith.constant 0 : index
    %c0_18 = arith.constant 0 : index
    %c0_19 = arith.constant 0 : index
    %17 = vector.load %arg5[%c0_16, %c0_17, %c0_18, %c0_19] : memref<1x1x4x4xf32, #tpu.memory_space<vmem>>, vector<1x1x4x4xf32>
    %18 = vector.shape_cast %17 : vector<1x1x4x4xf32> to vector<4x4xf32>
    %19 = vector.shape_cast %16 : vector<4x4xf32> to vector<1x1x4x4xf32>
    tpu.vector_store %arg5[%c0_16, %c0_17, %c0_18, %c0_19], %19 {strides = array<i32>} : memref<1x1x4x4xf32, #tpu.memory_space<vmem>>, vector<1x1x4x4xf32>,
    return
  }
  func.func @transform_0(%arg0: i32, %arg1: i32, %arg2: i32) -> (i32, i32, i32) {
    %c1_i32 = arith.constant 1 : i32
    %0 = arith.muli %arg1, %c1_i32 : i32
    %1 = arith.addi %0, %arg2 : i32
    %c0_i32 = arith.constant 0 : i32
    %c0_i32_0 = arith.constant 0 : i32
    return %arg0, %c0_i32, %1 : i32, i32, i32
  }
  func.func @transform_1(%arg0: i32, %arg1: i32, %arg2: i32) -> (i32, i32, i32, i32) {
    %c0_i32 = arith.constant 0 : i32
    %c0_i32_0 = arith.constant 0 : i32
    %c0_i32_1 = arith.constant 0 : i32
    return %arg0, %arg1, %c0_i32, %c0_i32_0 : i32, i32, i32, i32
  }
  func.func @transform_2(%arg0: i32, %arg1: i32, %arg2: i32) -> (i32, i32, i32, i32) {
    %c0_i32 = arith.constant 0 : i32
    %c0_i32_0 = arith.constant 0 : i32
    %c0_i32_1 = arith.constant 0 : i32
    return %arg0, %arg1, %c0_i32, %c0_i32_0 : i32, i32, i32, i32
  }
}

</mosaic_0001>

<bundles_post_ra>
// kernel: tpu_custom_call.1
= control target key start
LH: loop header
LB: loop body
LE: loop exit
PB: predicated region body
PF: predicated region fallthrough
CT: control target
= control target key end

     0   :  { %8 = vsyncpa [#allocation3], 0  ;;  %s731_s0 = inlined_call_operand.hbm [shape: f32[2,4,16], index: 0, kind: input, shape index: {}]   ;;  %s732_s1 = inlined_call_operand.vmem [shape: f32[2,1,4,1], index: 1, kind: output, shape index: {0}]   ;;  %s733_s2 = inlined_call_operand.hbm [shape: f32[2,1,4,4], index: 2, kind: output, shape index: {1}]  }
   0x1   :  { %10 = vsyncpa [#allocation3 + $0x1], 0 }
   0x2   :  { %11 = vsyncpa [#allocation4], 0 }
   0x3   :  { %13 = vsyncpa [#allocation4 + $0x1], 0  ;;  %s604_s9 = smov 0   ;;  %s606_s10 = smov 0  }
   0x4   :  { %s608_s11 = smov 0   ;;  %s610_s12 = smov 0  }
   0x5   :  { %s612_s13 = smov 0   ;;  %s614_s14 = smov 0  }
   0x6 LB: > { %s395_s15 = sadd.s32 4294967295, %s586_s14   ;;  %s396_s16 = sadd.s32 4294967294, %s586_s14   ;;  %s586_s14 = sphi %s614_s14, %s19_s14   ;;  %s582_s13 = sphi %s612_s13, %s742_s13   ;;  %s578_s12 = sphi %s610_s12, %s741_s12   ;;  %s574_s11 = sphi %s608_s11, %s740_s11   ;;  %s570_s10 = sphi %s606_s10, %s739_s10   ;;  %s566_s9 = sphi %s604_s9, %s738_s9  }
   0x7   : > { %s38_s17 = sadd.s32 1, %s582_s13  ;;  %s49_s18 = sadd.s32 1, %s574_s11 }
   0x8   : > { %p40_p0 = scmp.ge.s32.totalorder %s38_s17, 2  ;;  %p56_p1 = scmp.ne.s32.totalorder %s574_s11, %s570_s10 }
   0x9   : > { %p57_p2 = scmp.eq.s32.totalorder %s586_s14, 0  ;;  %p62_p3 = scmp.ne.s32.totalorder %s570_s10, %s566_s9 }
   0xa   : > { %s744_s17 = smov (%p40_p0, %s38_s17), 0  ;;  %p63_p5 = scmp.eq.s32.totalorder %s395_s15, 0 }
   0xb   : > { %p645_p4 = por %p57_p2, %p56_p1  ;;  %s44_s20 = ssub.s32 %s582_s13, %s744_s17 }
   0xc   : > { %p116_p6 = scmp.eq.s32.totalorder %s395_s15, 1  ;;  %p47_p7 = scmp.eq.s32.totalorder %s44_s20, 0 }
   0xd   : > { %p651_p8 = por %p63_p5, %p62_p3  ;;  %p122_p10 = scmp.eq.s32.totalorder %s396_s16, 1 }
   0xe   : > { %p655_p9 = por %p116_p6, %p56_p1  ;;  %p398_p12 = scmp.ge.s32.totalorder %s586_s14, 2 }
   0xf   : > { %s660_s23 = scalar_select %p47_p7, %s574_s11, %s49_s18  }
  0x10   : > { %p662_p11 = por %p122_p10, %p62_p3  ;;  %p423_p13 = scmp.lt.s32.totalorder %s586_s14, 2 }
  0x11   : > { %s142_s25 = sand.u32 1, %s574_s11   ;;  %s400_s27 = sshll.u32 %s582_s13, 2 }
  0x12   : > { %s399_s26 = sshll.u32 %s142_s25, 2  ;;  %s152_s30 = scalar_lea.hbm %s731_s0, %s400_s27 }
  0x13   : > { %s146_s3 = scalar_lea.vmem [#allocation2], %s399_s26  ;;  %s154_s5 = sshll.u32 %s152_s30, 4  ;;  %s155_s5 = int_to_ptr.hbm [resolvable:$true] %s154_s5 }
  0x14   : > { %s156_s4 = sshll.u32 %s146_s3, 4  ;;  %p416_p0 = pnand %p423_p13, %p645_p4  ;;  %s157_s4 = int_to_ptr.vmem [resolvable:$true] %s156_s4 }
  0x15   : > { %p401_p1 = scmp.ge.s32.totalorder %s586_s14, 1  ;;  %p161_p2 = scmp.lt.s32.totalorder %s586_s14, 3 }
  0x16   : > { %s143_s6 = scalar_lea.sflag [#allocation3], %s142_s25 }
  0x17   : > { %418 = dma.hbm_to_vmem [thread:$0]  (!%p416_p0), %s155_s5, 64, %s157_s4, %s143_s6  }
  0x18   : > { %p162_p3 = pnand %p401_p1, %p161_p2 }
  0x19   : > { %s678_s7 = sand.u32 (!%p162_p3), 1, %s570_s10  }
  0x1a   : > { %165 = sbr.rel (%p162_p3) target bundleno = 168 (0xa8), region = 24  ;;  %s402_s8 = sshll.u32 (!%p162_p3), %s678_s7, 2 }
  0x1b   : > { %s168_s15 = scalar_lea.sflag (!%p162_p3), [#allocation3], %s678_s7  ;;  %s171_s16 = scalar_lea.vmem (!%p162_p3), [#allocation2], %s402_s8 }
  0x1f   : > { %557 = dma.done.wait (%p651_p8), %s168_s15, 64  }
  0x20   : > { %559 = vsyncadd (%p651_p8), %s168_s15, 4294967232  ;;  %vm214_vm0 = vcmask 27648   ;;  %s199_s18 = scalar_lea.vmem [#allocation5], %s402_s8  ;;  %v588_v0 = vmov 0.0   ;;  %vm226_vm1 = vcmask 130048   ;;  %vm218_vm2 = vcmask 125952  }
  0x21   : > { %215 = vst.msk [vmem:[%s199_s18] sm:$0xf] %vm214_vm0, %v588_v0  ;;  %v216_v1 = vld [vmem:[%s171_s16] sm:$0xf]  ;;  %p201_p4 = scmp.lt.s32.totalorder %s578_s12, 1  ;;  %vm212_vm3 = vcmask 3072  }
  0x22   : > { %405 = vmatpush.xpose.msk.msra.mxu0 %vm226_vm1, %v216_v1  ;;  %v219_v2 = vsel %vm218_vm2, %v216_v1, 0.0  ;;  %s408_s27 = sshll.u32 %s578_s12, 2  ;;  %s277_s3 = sshll.u32 %s199_s18, 4  ;;  %s278_s3 = int_to_ptr.vmem [resolvable:$true] %s277_s3 }
  0x23   : > { %220 = vadd.xlane.f32.xlu0 %v219_v2  ;;  %s202_s19 = scalar_select %p201_p4, %s578_s12, 1 }
  0x24   : > { %s275_s30 = scalar_lea.hbm %s733_s2, %s408_s27  ;;  %s261_s5 = scalar_lea.sflag [#allocation4], %s678_s7 }
  0x25   : > { %406 = vmatmul.msk.f32.vlgmr.msra.gmra.mxu0 %vm226_vm1, %v216_v1  ;;  %s404_s20 = sshll.u32 %s202_s19, 2  ;;  %s279_s4 = sshll.u32 %s275_s30, 4  ;;  %s280_s4 = int_to_ptr.hbm [resolvable:$true] %s279_s4 }
  0x26   : > { %s207_s26 = scalar_lea.vmem %s732_s1, %s404_s20  ;;  %s518_s6 = sshra.s32 %s280_s4, 4  ;;  %s519_s6 = int_to_ptr.hbm [resolvable:$true] %s518_s6 }
  0x27   : > { %213 = vst.msk [vmem:[%s207_s26] sm:$0xf] %vm212_vm3, %v588_v0  ;;  %s520_s8 = scalar_lea.hbm %s519_s6, 4  ;;  %s524_s16 = scalar_lea.hbm %s733_s2, 8 }
  0x28   : > { %v225_v6 = vld [vmem:[%s199_s18] sm:$0xf]  ;;  %p521_p5 = scmp.ne.s32.totalorder %s519_s6, %s520_s8  ;;  %p525_p8 = scmp.lt.s32.totalorder %s519_s6, %s733_s2 }
  0x29   : > { %p526_p10 = scmp.lt.s32.totalorder %s524_s16, %s520_s8 }
  0x2a   : > { %p522_p6 = pnand %p521_p5, %p655_p9 }
  0x2b   : > { %p527_p13 = por %p526_p10, %p525_p8 }
  0x2c   : > { %p523_p7 = pneg %p522_p6 }
  0x2e   : > { %v217_v3 = vld [vmem:[%s207_s26] sm:$0xf]  ;;  %p528_p0 = pnand %p527_p13, %p523_p7 }
  0x96   : > { %v221_v4 = vpop.xlane.xlu0 %220 }
  0x97   : > { %v222_v5 = vadd.f32 %v221_v4, %v217_v3 }
  0x99   : > { %224 = vst.msk [vmem:[%s207_s26] sm:$0xf] %vm212_vm3, %v222_v5 }
  0xa2   : > { %v247_v7 = vpop.f32.mrf.mxu0 }
  0xa3   : > { %v250_v8 = vadd.f32 %v247_v7, %v225_v6 }
  0xa5   : > { %252 = vst.msk [vmem:[%s199_s18] sm:$0xf] %vm214_vm0, %v250_v8 }
  0xa6   : > { %531 = shalt.err (!%p528_p0)
}
  0xa7   : > { %413 = dma.vmem_to_hbm [thread:$0]  (%p655_p9), %s278_s3, 64, %s280_s4, %s261_s5  }
  0xa8 PF: > { %s301_s7 = sand.u32 1, %s566_s9   ;;  %p420_p1 = pnand %p398_p12, %p662_p11 }
  0xa9   : > { %s302_s18 = scalar_lea.sflag [#allocation4], %s301_s7 }
  0xaa   : > { %p421_p2 = pneg %p420_p1 }
  0xac   : > { %561 = dma.done.wait (%p421_p2), %s302_s18, 64  }
  0xad   : > { %563 = vsyncadd (%p421_p2), %s302_s18, 4294967232  ;;  %s19_s14 = sadd.s32 1, %s586_s14   ;;  %s738_s9 = smov %s570_s10 }
  0xae   : > { %p16_p3 = scmp.ge.s32.totalorder %s19_s14, 4   ;;  %s739_s10 = smov %s574_s11 }
  0xaf   : > { %s740_s11 = smov %s660_s23  ;;  %s741_s12 = smov %s582_s13 }
  0xb0   : > { %s742_s13 = smov %s744_s17  ;;  %18 = sbr.rel (!%p16_p3) target bundleno = 6 (0x6), region = 85 }
  0xb5   :  { %308 = vsyncpa [#allocation3], 1 }
  0xb6   :  { %310 = vsyncpa [#allocation3 + $0x1], 1 }
  0xb7   :  { %311 = vsyncpa [#allocation4], 1 }
  0xb8   :  { %313 = vsyncpa [#allocation4 + $0x1], 1 }

</bundles_post_ra>
